<compile_context>
chip_gen: v7x
topology: tpu7x:2x2x1
jax: 0.10.0
libtpu: 0.0.40
codegen_flags: <defaults>
</compile_context>

<pallas_src>
import jax
import jax.numpy as jnp
from jax.experimental import pallas as pl
from jax.experimental.pallas import tpu as pltpu

EPS = 1e-5


def gblock_kernel(p_ref, w_ref, o_ref, sum_ref, ssq_ref):
    # p_ref:   (CK, THW)  bf16  im2col patch tile of the current sample
    # w_ref:   (Cout, CK) bf16  flattened conv weight (resident, index (0,0))
    # o_ref:   (Cout, HW) f32   full-sample output block, resident over HW axis
    # sum_ref: (Cout, 1)  f32   VMEM scratch: per-channel running sum
    # ssq_ref: (Cout, 1)  f32   VMEM scratch: per-channel running sum of squares
    j = pl.program_id(1)
    thw = p_ref.shape[1]
    hw = o_ref.shape[1]

    @pl.when(j == 0)
    def _init():
        sum_ref[...] = jnp.zeros_like(sum_ref)
        ssq_ref[...] = jnp.zeros_like(ssq_ref)

    # Conv as MXU matmul: (Cout, CK) @ (CK, THW) -> (Cout, THW), f32 accumulate.
    acc = jnp.dot(w_ref[...], p_ref[...], preferred_element_type=jnp.float32)

    # Stash the raw conv tile into the resident output block; it stays in VMEM
    # until the last spatial tile of this sample (one HBM writeback per sample).
    if thw % 128 == 0:
        start = pl.multiple_of(j * thw, 128)
    else:  # fallback path only occurs when n_t == 1, so j == 0 anyway
        start = j * thw
    o_ref[:, pl.ds(start, thw)] = acc

    # Single-pass streaming InstanceNorm statistics: var = E[x^2] - mean^2.
    sum_ref[...] += jnp.sum(acc, axis=1, keepdims=True)
    ssq_ref[...] += jnp.sum(acc * acc, axis=1, keepdims=True)

    @pl.when(j == pl.num_programs(1) - 1)
    def _finalize():
        inv_hw = 1.0 / hw
        mean = sum_ref[...] * inv_hw
        var = jnp.maximum(ssq_ref[...] * inv_hw - mean * mean, 0.0)
        inv_std = jax.lax.rsqrt(var + EPS)
        o_ref[...] = jnp.maximum((o_ref[...] - mean) * inv_std, 0.0)


def _pick_spatial_tile(hw):
    # Largest lane-aligned tile (multiple of 128) dividing HW that leaves at
    # least two grid steps (exercises the streaming-stats path / keeps the DMA
    # pipeline busy); fall back to the full extent for odd sizes.
    for t in (2048, 1024, 512, 256, 128):
        if hw % t == 0 and hw // t >= 2:
            return t
    return hw


def gblock_forward(x, weight, bias=None):
    """x: (N, Cin, H, W) f32 NCHW.  weight: (Cout, Cin, 3, 3).  bias is ignored:
    InstanceNorm(affine=False) cancels a per-channel constant bias exactly."""
    del bias
    N, Cin, H, W = x.shape
    Cout, _, K, _ = weight.shape
    assert K == 3, "this script fixes kernel_size=3, stride=1, padding=1"

    HW = H * W
    CK = Cin * K * K
    THW = _pick_spatial_tile(HW)
    n_t = HW // THW

    # Reflect padding (padding_mode='reflect', padding=1) -- plain-JAX glue.
    xp = jnp.pad(x, ((0, 0), (0, 0), (1, 1), (1, 1)), mode="reflect")

    # im2col, transposed so the spatial axis is minormost (lane dim).
    # Feature order is (c, kh, kw) to match weight.reshape(Cout, Cin*K*K).
    cols = [xp[:, :, kh:kh + H, kw:kw + W] for kh in range(K) for kw in range(K)]
    col = jnp.stack(cols, axis=2)                              # (N, Cin, K*K, H, W)
    patches_t = col.reshape(N, CK, HW).astype(jnp.bfloat16)    # (N, CK, HW)

    w_mat = weight.reshape(Cout, CK).astype(jnp.bfloat16)      # (Cout, CK)

    # VMEM budget: resident output block (Cout*HW f32, double-buffered) +
    # patch tile (CK*THW bf16, double-buffered) + tiny stats scratch.
    # Far below 32 MiB at CycleGAN residual-block sizes; raise the limit for
    # very large early feature maps / v7x as needed.
    out = pl.pallas_call(
        gblock_kernel,
        out_shape=jax.ShapeDtypeStruct((N, Cout, HW), jnp.float32),
        grid_spec=pltpu.PrefetchScalarGridSpec(
            num_scalar_prefetch=0,
            grid=(N, n_t),
            in_specs=[
                pl.BlockSpec((pl.Squeezed(), CK, THW), lambda n, j: (n, 0, j)),
                pl.BlockSpec((Cout, CK), lambda n, j: (0, 0)),
            ],
            out_specs=pl.BlockSpec((pl.Squeezed(), Cout, HW),
                                   lambda n, j: (n, 0, 0)),
            scratch_shapes=[
                pltpu.VMEM((Cout, 1), jnp.float32),
                pltpu.VMEM((Cout, 1), jnp.float32),
            ],
        ),
        compiler_params=pltpu.CompilerParams(
            dimension_semantics=("parallel", "arbitrary"),
            vmem_limit_bytes=32 * 1024 * 1024,
        ),
    )(patches_t, w_mat)

    # (N, Cout, HW) is already NCHW order: reshape only, no transpose.
    return out.reshape(N, Cout, H, W)


def reference_forward(x, weight, bias):
    """Pure-JAX reference of the PyTorch GBlock(down=True) forward pass."""
    xp = jnp.pad(x, ((0, 0), (0, 0), (1, 1), (1, 1)), mode="reflect")
    y = jax.lax.conv_general_dilated(
        xp, weight, window_strides=(1, 1), padding="VALID",
        dimension_numbers=("NCHW", "OIHW", "NCHW"),
        precision=jax.lax.Precision.HIGHEST)
    y = y + bias.reshape(1, -1, 1, 1)          # bias kept here; it cancels below
    mean = jnp.mean(y, axis=(2, 3), keepdims=True)
    var = jnp.mean((y - mean) ** 2, axis=(2, 3), keepdims=True)
    y = (y - mean) * jax.lax.rsqrt(var + EPS)
    return jnp.maximum(y, 0.0)


# TODO(synk): down=False (ConvTranspose2d) branch of GBlock is not implemented;
# this script covers the down=True (reflect-padded Conv2d) path.

if __name__ == "__main__":
    key = jax.random.PRNGKey(0)
    N, Cin, Cout, H, W, K = 2, 4, 8, 16, 16, 3

    kx, kw, kb = jax.random.split(key, 3)
    x = jax.random.normal(kx, (N, Cin, H, W), dtype=jnp.float32)
    # Deterministic synthetic parameters (shapes match nn.Conv2d(Cin, Cout, 3)).
    weight = jax.random.normal(kw, (Cout, Cin, K, K), dtype=jnp.float32) * 0.1
    bias = jax.random.normal(kb, (Cout,), dtype=jnp.float32) * 0.1

    out = jax.block_until_ready(gblock_forward(x, weight, bias))
    assert out.shape == (N, Cout, H, W)

    # The kernel feeds the MXU bf16 operands; compare against an f32 reference
    # evaluated on the same bf16-quantized inputs (bias included in the
    # reference -- it cancels through InstanceNorm, as relied on by the kernel).
    x_q = x.astype(jnp.bfloat16).astype(jnp.float32)
    w_q = weight.astype(jnp.bfloat16).astype(jnp.float32)
    ref = jax.block_until_ready(reference_forward(x_q, w_q, bias))

    assert jnp.allclose(out, ref, atol=1e-3, rtol=1e-3), "mismatch vs JAX reference"

    print("KERNEL_OK")
</pallas_src>

<mosaic_0001>
module attributes {stable_mosaic.version = 11 : i64} {
  func.func @gblock_kernel(%arg0: i32, %arg1: i32, %arg2: memref<1x36x128xbf16, #tpu.memory_space<vmem>>, %arg3: memref<8x36xbf16, #tpu.memory_space<vmem>>, %arg4: memref<1x8x256xf32, #tpu.memory_space<vmem>>, %arg5: memref<8x1xf32, #tpu.memory_space<vmem>>, %arg6: memref<8x1xf32, #tpu.memory_space<vmem>>) attributes {dimension_semantics = [#tpu.dimension_semantics<parallel>, #tpu.dimension_semantics<arbitrary>], iteration_bounds = array<i64: 2, 2>, scalar_prefetch = 0 : i64, scratch_operands = 2 : i64, tpu.core_type = #tpu.core_type<tc>, window_params = [{transform_indices = @transform_0, window_bounds = array<i64: 1, 36, 128>}, {pipeline_mode = #tpu.pipeline_mode<synchronous>, transform_indices = @transform_1, window_bounds = array<i64: 8, 36>}, {transform_indices = @transform_2, window_bounds = array<i64: 1, 8, 256>}]} {
    %c0_i32 = arith.constant 0 : i32
    %0 = arith.cmpi eq, %arg1, %c0_i32 : i32
    %1 = arith.extui %0 : i1 to i32
    %c0_i32_0 = arith.constant 0 : i32
    %2 = arith.cmpi ne, %1, %c0_i32_0 : i32
    scf.if %2 {
      %cst_18 = arith.constant 0.000000e+00 : f32
      %27 = vector.broadcast %cst_18 : f32 to vector<8x1xf32>
      %c0_19 = arith.constant 0 : index
      %c0_20 = arith.constant 0 : index
      %28 = vector.load %arg5[%c0_19, %c0_20] : memref<8x1xf32, #tpu.memory_space<vmem>>, vector<8x1xf32>
      tpu.vector_store %arg5[%c0_19, %c0_20], %27 {strides = array<i32>} : memref<8x1xf32, #tpu.memory_space<vmem>>, vector<8x1xf32>,
      %cst_21 = arith.constant 0.000000e+00 : f32
      %29 = vector.broadcast %cst_21 : f32 to vector<8x1xf32>
      %c0_22 = arith.constant 0 : index
      %c0_23 = arith.constant 0 : index
      %30 = vector.load %arg6[%c0_22, %c0_23] : memref<8x1xf32, #tpu.memory_space<vmem>>, vector<8x1xf32>
      tpu.vector_store %arg6[%c0_22, %c0_23], %29 {strides = array<i32>} : memref<8x1xf32, #tpu.memory_space<vmem>>, vector<8x1xf32>,
    } else {
    }
    %c0 = arith.constant 0 : index
    %c0_1 = arith.constant 0 : index
    %3 = vector.load %arg3[%c0, %c0_1] : memref<8x36xbf16, #tpu.memory_space<vmem>>, vector<8x36xbf16>
    %c0_2 = arith.constant 0 : index
    %c0_3 = arith.constant 0 : index
    %c0_4 = arith.constant 0 : index
    %4 = vector.load %arg2[%c0_2, %c0_3, %c0_4] : memref<1x36x128xbf16, #tpu.memory_space<vmem>>, vector<1x36x128xbf16>
    %5 = vector.shape_cast %4 : vector<1x36x128xbf16> to vector<36x128xbf16>
    %cst = arith.constant dense<0.000000e+00> : vector<8x128xf32>
    %6 = tpu.matmul %3, %5, %cst {dimension_numbers = #tpu.dot_dimension_numbers<[1], [0], [0], [1], [0, 0, 1, 1], [], []>} : vector<8x36xbf16>, vector<36x128xbf16>, vector<8x128xf32> -> vector<8x128xf32>
    %c128_i32 = arith.constant 128 : i32
    %7 = arith.muli %arg1, %c128_i32 : i32
    %8 = tpu.assume_multiple %7, 128 : i32
    %c0_5 = arith.constant 0 : index
    %c0_6 = arith.constant 0 : index
    %9 = arith.index_cast %8 : i32 to index
    %10 = vector.load %arg4[%c0_5, %c0_6, %9] : memref<1x8x256xf32, #tpu.memory_space<vmem>>, vector<1x8x128xf32>
    %11 = vector.shape_cast %10 : vector<1x8x128xf32> to vector<8x128xf32>
    %12 = vector.shape_cast %6 : vector<8x128xf32> to vector<1x8x128xf32>
    tpu.vector_store %arg4[%c0_5, %c0_6, %9], %12 {strides = array<i32>} : memref<1x8x256xf32, #tpu.memory_space<vmem>>, vector<1x8x128xf32>,
    %c0_7 = arith.constant 0 : index
    %c0_8 = arith.constant 0 : index
    %13 = vector.load %arg5[%c0_7, %c0_8] : memref<8x1xf32, #tpu.memory_space<vmem>>, vector<8x1xf32>
    %cst_9 = arith.constant dense<0.000000e+00> : vector<8xf32>
    %14 = vector.multi_reduction <add>, %6, %cst_9 [1] : vector<8x128xf32> to vector<8xf32>
    %15 = vector.shape_cast %14 : vector<8xf32> to vector<8x1xf32>
    %16 = arith.addf %13, %15 : vector<8x1xf32>
    %c0_10 = arith.constant 0 : index
    %c0_11 = arith.constant 0 : index
    %17 = vector.load %arg5[%c0_10, %c0_11] : memref<8x1xf32, #tpu.memory_space<vmem>>, vector<8x1xf32>
    tpu.vector_store %arg5[%c0_10, %c0_11], %16 {strides = array<i32>} : memref<8x1xf32, #tpu.memory_space<vmem>>, vector<8x1xf32>,
    %c0_12 = arith.constant 0 : index
    %c0_13 = arith.constant 0 : index
    %18 = vector.load %arg6[%c0_12, %c0_13] : memref<8x1xf32, #tpu.memory_space<vmem>>, vector<8x1xf32>
    %19 = arith.mulf %6, %6 : vector<8x128xf32>
    %cst_14 = arith.constant dense<0.000000e+00> : vector<8xf32>
    %20 = vector.multi_reduction <add>, %19, %cst_14 [1] : vector<8x128xf32> to vector<8xf32>
    %21 = vector.shape_cast %20 : vector<8xf32> to vector<8x1xf32>
    %22 = arith.addf %18, %21 : vector<8x1xf32>
    %c0_15 = arith.constant 0 : index
    %c0_16 = arith.constant 0 : index
    %23 = vector.load %arg6[%c0_15, %c0_16] : memref<8x1xf32, #tpu.memory_space<vmem>>, vector<8x1xf32>
    tpu.vector_store %arg6[%c0_15, %c0_16], %22 {strides = array<i32>} : memref<8x1xf32, #tpu.memory_space<vmem>>, vector<8x1xf32>,
    %c1_i32 = arith.constant 1 : i32
    %24 = arith.cmpi eq, %arg1, %c1_i32 : i32
    %25 = arith.extui %24 : i1 to i32
    %c0_i32_17 = arith.constant 0 : i32
    %26 = arith.cmpi ne, %25, %c0_i32_17 : i32
    scf.if %26 {
      %c0_18 = arith.constant 0 : index
      %c0_19 = arith.constant 0 : index
      %27 = vector.load %arg5[%c0_18, %c0_19] : memref<8x1xf32, #tpu.memory_space<vmem>>, vector<8x1xf32>
      %cst_20 = arith.constant 3.906250e-03 : f32
      %28 = vector.broadcast %cst_20 : f32 to vector<8x1xf32>
      %29 = arith.mulf %27, %28 : vector<8x1xf32>
      %c0_21 = arith.constant 0 : index
      %c0_22 = arith.constant 0 : index
      %30 = vector.load %arg6[%c0_21, %c0_22] : memref<8x1xf32, #tpu.memory_space<vmem>>, vector<8x1xf32>
      %cst_23 = arith.constant 3.906250e-03 : f32
      %31 = vector.broadcast %cst_23 : f32 to vector<8x1xf32>
      %32 = arith.mulf %30, %31 : vector<8x1xf32>
      %33 = arith.mulf %29, %29 : vector<8x1xf32>
      %34 = arith.subf %32, %33 : vector<8x1xf32>
      %cst_24 = arith.constant 0.000000e+00 : f32
      %35 = vector.broadcast %cst_24 : f32 to vector<8x1xf32>
      %36 = arith.maximumf %34, %35 : vector<8x1xf32>
      %cst_25 = arith.constant 9.99999974E-6 : f32
      %37 = vector.broadcast %cst_25 : f32 to vector<8x1xf32>
      %38 = arith.addf %36, %37 : vector<8x1xf32>
      %39 = math.rsqrt %38 : vector<8x1xf32>
      %c0_26 = arith.constant 0 : index
      %c0_27 = arith.constant 0 : index
      %c0_28 = arith.constant 0 : index
      %40 = vector.load %arg4[%c0_26, %c0_27, %c0_28] : memref<1x8x256xf32, #tpu.memory_space<vmem>>, vector<1x8x256xf32>
      %41 = vector.shape_cast %40 : vector<1x8x256xf32> to vector<8x256xf32>
      %42 = vector.broadcast %29 : vector<8x1xf32> to vector<8x256xf32>
      %43 = arith.subf %41, %42 : vector<8x256xf32>
      %44 = vector.broadcast %39 : vector<8x1xf32> to vector<8x256xf32>
      %45 = arith.mulf %43, %44 : vector<8x256xf32>
      %cst_29 = arith.constant 0.000000e+00 : f32
      %46 = vector.broadcast %cst_29 : f32 to vector<8x256xf32>
      %47 = arith.maximumf %45, %46 : vector<8x256xf32>
      %c0_30 = arith.constant 0 : index
      %c0_31 = arith.constant 0 : index
      %c0_32 = arith.constant 0 : index
      %48 = vector.load %arg4[%c0_30, %c0_31, %c0_32] : memref<1x8x256xf32, #tpu.memory_space<vmem>>, vector<1x8x256xf32>
      %49 = vector.shape_cast %48 : vector<1x8x256xf32> to vector<8x256xf32>
      %50 = vector.shape_cast %47 : vector<8x256xf32> to vector<1x8x256xf32>
      tpu.vector_store %arg4[%c0_30, %c0_31, %c0_32], %50 {strides = array<i32>} : memref<1x8x256xf32, #tpu.memory_space<vmem>>, vector<1x8x256xf32>,
    } else {
    }
    return
  }
  func.func @transform_0(%arg0: i32, %arg1: i32) -> (i32, i32, i32) {
    %c0_i32 = arith.constant 0 : i32
    %c0_i32_0 = arith.constant 0 : i32
    return %arg0, %c0_i32, %arg1 : i32, i32, i32
  }
  func.func @transform_1(%arg0: i32, %arg1: i32) -> (i32, i32) {
    %c0_i32 = arith.constant 0 : i32
    %c0_i32_0 = arith.constant 0 : i32
    %c0_i32_1 = arith.constant 0 : i32
    return %c0_i32, %c0_i32_0 : i32, i32
  }
  func.func @transform_2(%arg0: i32, %arg1: i32) -> (i32, i32, i32) {
    %c0_i32 = arith.constant 0 : i32
    %c0_i32_0 = arith.constant 0 : i32
    %c0_i32_1 = arith.constant 0 : i32
    return %arg0, %c0_i32, %c0_i32_0 : i32, i32, i32
  }
}

</mosaic_0001>

<bundles_post_ra>
// kernel: tpu_custom_call.1
= control target key start
LH: loop header
LB: loop body
LE: loop exit
PB: predicated region body
PF: predicated region fallthrough
CT: control target
= control target key end

     0   :  { %7 = vsyncpa [#allocation6], 0  ;;  %s883_s0 = inlined_call_operand.vmem [shape: bf16[2,36,256], index: 0, kind: input, shape index: {}]   ;;  %s884_s1 = inlined_call_operand.vmem [shape: bf16[8,36], index: 1, kind: input, shape index: {}]   ;;  %s885_s2 = inlined_call_operand.hbm [shape: f32[2,8,256], index: 2, kind: output, shape index: {}]  }
   0x1   :  { %9 = vsyncpa [#allocation6 + $0x1], 0  ;;  %s705_s9 = smov 0   ;;  %s707_s10 = smov 0  }
   0x2   :  { %s709_s11 = smov 0   ;;  %s711_s12 = smov 0  }
   0x3   :  { %s713_s13 = smov 0   ;;  %s715_s14 = smov 0  }
   0x4   :  { %s717_s15 = smov 0   ;;  %s719_s16 = smov 0  }
   0x5   :  { %s721_s17 = smov 0   ;;  %s723_s18 = smov 0  }
   0x6 LB: > { %s438_s19 = sadd.s32 4294967295, %s683_s18   ;;  %s439_s20 = sadd.s32 4294967294, %s683_s18   ;;  %s683_s18 = sphi %s723_s18, %s15_s18   ;;  %s679_s17 = sphi %s721_s17, %s897_s17   ;;  %s675_s16 = sphi %s719_s16, %s896_s16   ;;  %s671_s15 = sphi %s717_s15, %s895_s15   ;;  %s667_s14 = sphi %s715_s14, %s894_s14   ;;  %s663_s13 = sphi %s713_s13, %s893_s13   ;;  %s659_s12 = sphi %s711_s12, %s892_s12   ;;  %s655_s11 = sphi %s709_s11, %s891_s11   ;;  %s651_s10 = sphi %s707_s10, %s890_s10   ;;  %s647_s9 = sphi %s705_s9, %s889_s9  }
   0x7   : > { %s24_s21 = sadd.s32 1, %s675_s16  ;;  %s27_s22 = sadd.s32 1, %s679_s17 }
   0x8   : > { %p25_p0 = scmp.ge.s32.totalorder %s24_s21, 2  ;;  %s36_s23 = sadd.s32 1, %s663_s13 }
   0x9   : > { %p43_p1 = scmp.ne.s32.totalorder %s663_s13, %s659_s12  ;;  %p44_p2 = scmp.eq.s32.totalorder %s683_s18, 0 }
   0xa   : > { %s899_s21 = smov (%p25_p0, %s24_s21), 0  ;;  %s901_s22 = smov (!%p25_p0, %s27_s22), %s679_s17 }
   0xb   : > { %s32_s24 = ssub.s32 %s675_s16, %s899_s21  ;;  %p768_p3 = por %p44_p2, %p43_p1 }
   0xc   : > { %p29_p4 = scmp.ge.s32.totalorder %s901_s22, 2  ;;  %s83_s26 = sadd.s32 1, %s655_s11 }
   0xd   : > { %p93_p5 = scmp.ne.s32.totalorder %s655_s11, %s651_s10  ;;  %p94_p6 = scmp.eq.s32.totalorder %s438_s19, 3 }
   0xe   : > { %s903_s22 = smov (%p29_p4, %s901_s22), 0  ;;  %p99_p8 = scmp.ne.s32.totalorder %s651_s10, %s647_s9 }
   0xf   : > { %p777_p7 = por %p94_p6, %p93_p5  ;;  %s31_s28 = ssub.s32 %s679_s17, %s903_s22 }
  0x10   : > { %p100_p9 = scmp.eq.s32.totalorder %s439_s20, 3  ;;  %s33_s29 = sor.u32 %s32_s24, %s31_s28 }
  0x11   : > { %p81_p10 = scmp.eq.s32.totalorder %s31_s28, 0  ;;  %p34_p11 = scmp.eq.s32.totalorder %s33_s29, 0 }
  0x12   : > { %p785_p12 = por %p100_p9, %p99_p8  ;;  %p441_p13 = scmp.ge.s32.totalorder %s683_s18, 4 }
  0x13   : > { %s790_s3 = scalar_select %p81_p10, %s655_s11, %s83_s26  }
  0x14   : > { %s793_s4 = scalar_select %p34_p11, %s663_s13, %s36_s23  }
  0x15   : > { %119 = sbr.rel (%p441_p13) target bundleno = 38 (0x26), region = 20 }
  0x1c   : > { %122 = sbr.rel (!%p768_p3) target bundleno = 38 (0x26), region = 24  ;;  %s124_s5 = sand.u32 (%p768_p3), 1, %s663_s13  }
  0x1d   : > { %s474_s6 = smul.u32 (%p768_p3), 10, %s679_s17 }
  0x1e   : > { %s473_s7 = smul.u32 (%p768_p3), 20, %s124_s5 }
  0x1f   : > { %s128_s8 = sadd.s32 (%p768_p3), %s675_s16, %s474_s6 }
  0x20   : > { %s442_s19 = sshll.u32 (%p768_p3), %s128_s8, 2  ;;  %s126_s23 = scalar_lea.vmem (%p768_p3), [#allocation4], %s473_s7 }
  0x21   : > { %s130_s26 = scalar_lea.vmem (%p768_p3), %s883_s0, %s442_s19 }
  0x22   : > { %v146_v0 = vld [vmem:[%s130_s26] sm:$0xf] (%p768_p3)  ;;  %v148_v1 = vld [vmem:[%s130_s26 + $0x8] sm:$0xf] (%p768_p3)  ;;  %v150_v2 = vld [vmem:[%s130_s26 + $0x10] sm:$0xf] (%p768_p3) }
  0x23   : > { %147 = vst [vmem:[%s126_s23] sm:$0xf] %v146_v0  ;;  %149 = vst [vmem:[%s126_s23 + $0x4] sm:$0xf] %v148_v1  ;;  %v152_v3 = vld [vmem:[%s130_s26 + $0x18] sm:$0xf] }
  0x24   : > { %151 = vst [vmem:[%s126_s23 + $0x8] sm:$0xf] %v150_v2  ;;  %v154_v4 = vld [vmem:[%s130_s26 + $0x20] sm:$0xf]  ;;  %153 = vst [vmem:[%s126_s23 + $0xc] sm:$0xf] %v152_v3 }
  0x25   : > { %155 = vst [vmem:[%s126_s23 + $0x10] sm:$0xf] %v154_v4 }
  0x26 PF: > { %p443_p0 = scmp.ge.s32.totalorder %s683_s18, 1  ;;  %p187_p1 = scmp.lt.s32.totalorder %s683_s18, 5 }
  0x28   : > { %p188_p2 = pnand %p443_p0, %p187_p1 }
  0x29   : > { %s194_s25 = sand.u32 (!%p188_p2), 1, %s659_s12   ;;  %s212_s28 = sand.u32 (!%p188_p2), 1, %s651_s10  }
  0x2a   : > { %191 = sbr.rel (%p188_p2) target bundleno = 613 (0x265), region = 65  ;;  %s444_s5 = sshll.u32 (!%p188_p2), %s212_s28, 4 }
  0x2b   : > { %s475_s29 = smul.u32 (!%p188_p2), 20, %s194_s25  ;;  %s810_s7 = scalar_lea.vmem (!%p188_p2), [#allocation5], %s444_s5 }
  0x2c   : > { %p445_p3 = scmp.ne.s32.totalorder (!%p188_p2), %s667_s14, 0 }
  0x2d   : > { %s196_s6 = scalar_lea.vmem (!%p188_p2), [#allocation4], %s475_s29 }
  0x31   : > { %219 = sbr.rel (%p445_p3) target bundleno = 56 (0x38), region = 73  ;;  %vm220_vm0 = vcmask (!%p445_p3), 7168   ;;  %v685_v5 = vmov (!%p445_p3), 0.0  }
  0x32   : > { %221 = vst.msk [vmem:[#allocation2] sm:$0xff] (!%p445_p3), %vm220_vm0, %v685_v5  ;;  %222 = vst.msk [vmem:[#allocation3] sm:$0xff] (!%p445_p3), %vm220_vm0, %v685_v5 }
  0x38 PF: > { %v567_v6 = vld [vmem:[%s196_s6] sm:$0xff]   ;;  %v686_v7 = vmov 0.0   ;;  %v568_v8 = vld [vmem:[%s196_s6 + $0x8] sm:$0xff]   ;;  %v569_v9 = vld [vmem:[%s196_s6 + $0x10] ss:$0 sps:$4 sm:$0x33]  }
  0x39   : > { %463 = vmatprep.subr.bf16.mxu0 %v686_v7  ;;  %vm687_vm1 = vmmov 0   ;;  %vm248_vm2 = vcmask 1041408   ;;  %v223_v11 = vld [vmem:[%s884_s1] sm:$0xf]  ;;  %vm244_vm3 = vcmask 293888   ;;  %s450_s19 = sshll.u32 %s667_s14, 7 }
  0x3a   : > { %464 = vmatpush3.bf16.msra.mxu0 %v567_v6  ;;  %469 = vmatprep.mubr.msk.bf16.mxu0 %vm687_vm1, %v686_v7  ;;  %v250_v10 = vsel %vm248_vm2, %v569_v9, 0  ;;  %s293_s20 = sshra.s32 %s450_s19, 7  ;;  %v298_v17 = vld [vmem:[#allocation2] sm:$0xff]  ;;  %vm302_vm4 = vcmask 7168   ;;  %v304_v20 = vld [vmem:[#allocation3] sm:$0xff]  ;;  %p452_p4 = scmp.ne.s32.totalorder %s667_s14, 1 }
  0x3b   : > { %465 = vmatprep.subr.bf16.mxu0 %v686_v7  ;;  %s451_s24 = sshll.u32 %s293_s20, 3  ;;  %v688_v25 = vmov (!%p452_p4), 0  }
  0x3c   : > { %s296_s26 = scalar_lea.vmem %s810_s7, %s451_s24 [#allocation5]  ;;  %570 = vset.pattern.permute.xlu0 (!%p452_p4), %v688_v25 }
  0x3e   : > { %466 = vmatpush3.bf16.msra.mxu0 %v568_v8 }
  0x3f   : > { %467 = vmatprep.subr.bf16.mxu0 %v686_v7 }
  0x42   : > { %468 = vmatpush3.bf16.msra.mxu0 %v250_v10 }
  0x45   : > { %470 = vmatmul.mubr.msk.bf16.vlgmr.msra.gmra.mrb[0].mxu0 %vm244_vm3, %v223_v11 }
 0x118   : > { %v286_v12 = vpop.f32.mrb[0].mxu0 }
 0x119   : > { %297 = vst [vmem:[%s296_s26] sm:$0xff] %v286_v12  ;;  %299 = vadd.xlane.f32.xlu0 %v286_v12  ;;  %v471_v13 = vpop.f32.mrb[1].mxu0  ;;  %v305_v16 = vmul.f32 %v286_v12, %v286_v12 }
 0x11a   : > { %v289_v14 = vpop.f32.mrb[2].mxu0 }
 0x11b   : > { %v472_v15 = vpop.f32.mrb[3].mxu0 }
 0x11d   : > { %306 = vadd.xlane.f32.xlu0 %v305_v16 }
 0x120   : > { %v323_v34 = vld [vmem:[%s810_s7] sm:$0xff] (!%p452_p4)  ;;  %v324_v35 = vld [vmem:[%s810_s7 + $0x8] sm:$0xff] (!%p452_p4) }
 0x1a6   : > { %v300_v18 = vpop.xlane.xlu0 %299 }
 0x1a7   : > { %v301_v19 = vadd.f32 %v300_v18, %v298_v17  ;;  %313 = sbr.rel (%p452_p4) target bundleno = 589 (0x24d), region = 77 }
 0x1a9   : > { %303 = vst.msk [vmem:[#allocation2] sm:$0xff] %vm302_vm4, %v301_v19 }
 0x1aa   : > { %v307_v21 = vpop.xlane.xlu0 %306 }
 0x1ab   : > { %v308_v22 = vadd.f32 %v307_v21, %v304_v20 }
 0x1ad   : > { %309 = vst.msk [vmem:[#allocation3] sm:$0xff] %vm302_vm4, %v308_v22 }
 0x1b0   : > { %v314_v23 = vld [vmem:[#allocation2] sm:$0xff] }
 0x1b1   : > { %v315_v26 = vmul.f32 0.00390625, %v314_v23 }
 0x1b3   : > { %327 = vperm.xlu0 %570, %v315_v26   ;;  %v318_v28 = vmul.f32 %v315_v26, %v315_v26 }
 0x1b4   : > { %v316_v24 = vld [vmem:[#allocation3] sm:$0xff] }
 0x1b5   : > { %v317_v27 = vmul.f32 0.00390625, %v316_v24 }
 0x1b7   : > { %v319_v29 = vsub.f32 %v317_v27, %v318_v28 }
 0x1b9   : > { %v320_v30 = vmax.f32 %v319_v29, 0.0 }
 0x1bb   : > { %v321_v31 = vadd.f32 1e-05, %v320_v30 }
 0x1bd   : > { %571 = vrsqrt.f32 %v321_v31 }
 0x1c7   : > { %v572_v32 = vpop.eup %571 }
 0x1c8   : > { %334 = vperm.xlu0 %570, %v572_v32  }
 0x232   : > { %v328_v33 = vpop.permute.xlu0 %327 }
 0x233   : > { %v330_v36 = vsub.f32 %v323_v34, %v328_v33  ;;  %v331_v37 = vsub.f32 %v324_v35, %v328_v33 }
 0x247   : > { %v335_v38 = vpop.permute.xlu0 %334 }
 0x248   : > { %v337_v39 = vmul.f32 %v335_v38, %v330_v36  ;;  %v338_v40 = vmul.f32 %v335_v38, %v331_v37 }
 0x24a   : > { %v339_v41 = vmax.f32 %v337_v39, 0.0  ;;  %v340_v42 = vmax.f32 %v338_v40, 0.0 }
 0x24c   : > { %341 = vst [vmem:[%s810_s7] sm:$0xff] %v339_v41  ;;  %342 = vst [vmem:[%s810_s7 + $0x8] sm:$0xff] %v340_v42 }
 0x24d PF: > { %s458_s14 = sshll.u32 %s671_s15, 8  ;;  %s358_s5 = sshll.u32 %s810_s7, 4  ;;  %s359_s5 = int_to_ptr.vmem [resolvable:$true] %s358_s5 }
 0x24e   : > { %s827_s29 = scalar_lea.hbm %s885_s2, %s458_s14  ;;  %s344_s6 = scalar_lea.sflag [#allocation6], %s212_s28 }
 0x24f   : > { %s573_s12 = scalar_lea.vmem %s359_s5, 256  ;;  %s689_s8 = smov [#allocation5]  }
 0x250   : > { %p574_p5 = scmp.ne.s32.totalorder %s359_s5, %s573_s12  ;;  %s577_s19 = sshll.u32 %s689_s8, 4  ;;  %s578_s19 = int_to_ptr.vmem [resolvable:$false] %s577_s19 }
 0x251   : > { %s579_s20 = scalar_lea.vmem %s578_s19, 512  ;;  %p580_p9 = scmp.lt.s32.totalorder %s359_s5, %s578_s19 }
 0x252   : > { %p575_p6 = pnand %p574_p5, %p777_p7  ;;  %p581_p10 = scmp.lt.s32.totalorder %s579_s20, %s573_s12 }
 0x254   : > { %p576_p8 = pneg %p575_p6  ;;  %p582_p11 = por %p581_p10, %p580_p9 }
 0x256   : > { %p583_p13 = pnand %p582_p11, %p576_p8 }
 0x258   : > { %586 = shalt.err (!%p583_p13)
}
 0x259   : > { %s587_s15 = scalar_lea.hbm %s827_s29, 256  ;;  %s591_s24 = scalar_lea.hbm %s885_s2, 512 }
 0x25a   : > { %p588_p0 = scmp.ne.s32.totalorder %s827_s29, %s587_s15  ;;  %p592_p3 = scmp.lt.u32.totalorder %s827_s29, %s885_s2 }
 0x25b   : > { %p593_p4 = scmp.lt.u32.totalorder %s591_s24, %s587_s15  ;;  %p595_p6 = scmp.lt.u32.totalorder %s587_s15, %s827_s29 }
 0x25c   : > { %p589_p1 = pnand %p588_p0, %p777_p7 }
 0x25d   : > { %p594_p5 = por %p593_p4, %p592_p3 }
 0x25e   : > { %p590_p2 = pneg %p589_p1 }
 0x25f   : > { %p596_p8 = por %p595_p6, %p594_p5 }
 0x261   : > { %p597_p9 = pnand %p596_p8, %p590_p2 }
 0x263   : > { %600 = shalt.err (!%p597_p9)
}
 0x264   : > { %476 = dma.vmem_to_hbm [thread:$0]  (%p777_p7), %s359_s5, 256, %s827_s29, %s344_s6  }
 0x265 PF: > { %p482_p10 = scmp.ge.s32.totalorder %s683_s18, 2  ;;  %s370_s23 = sand.u32 1, %s647_s9  }
 0x266   : > { %s371_s25 = scalar_lea.sflag [#allocation6], %s370_s23 }
 0x267   : > { %p479_p11 = pnand %p482_p10, %p785_p12 }
 0x269   : > { %642 = dma.done.wait (!%p479_p11), %s371_s25, 256  }
 0x26a   : > { %644 = vsyncadd (!%p479_p11), %s371_s25, 4294967040  ;;  %s15_s18 = sadd.s32 1, %s683_s18   ;;  %s889_s9 = smov %s651_s10 }
 0x26b   : > { %p12_p13 = scmp.ge.s32.totalorder %s15_s18, 6   ;;  %s890_s10 = smov %s655_s11 }
 0x26c   : > { %s891_s11 = smov %s790_s3  ;;  %s892_s12 = smov %s663_s13 }
 0x26d   : > { %s893_s13 = smov %s793_s4  ;;  %s894_s14 = smov %s675_s16 }
 0x26e   : > { %s895_s15 = smov %s679_s17  ;;  %s896_s16 = smov %s899_s21 }
 0x26f   : > { %s897_s17 = smov %s903_s22  ;;  %14 = sbr.rel (!%p12_p13) target bundleno = 6 (0x6), region = 118 }
 0x276   :  { %376 = vsyncpa [#allocation6], 1 }
 0x277   :  { %378 = vsyncpa [#allocation6 + $0x1], 1 }

</bundles_post_ra>
